<compile_context>
chip_gen: v7x
topology: tpu7x:2x2x1
jax: 0.10.0
libtpu: 0.0.40
codegen_flags: <defaults>
</compile_context>

<pallas_src>
import jax
import jax.numpy as jnp
from jax import lax
from jax.experimental import pallas as pl
from jax.experimental.pallas import tpu as pltpu


def _round_up(x, m):
    return (x + m - 1) // m * m


def _cdiv(a, b):
    return (a + b - 1) // b


def _pick_stripe(lout, n_batch):
    """Largest power-of-two stripe (<=1024 lanes) without gross padding, while
    keeping >=2 parallel grid steps when possible (v7x has 2 TensorCores)."""
    t = 1024
    while t > 128 and lout <= t // 2:
        t //= 2
    while t > 128 and n_batch * _cdiv(lout, t) < 2:
        t //= 2
    return t


def bisenetv2_head(x_nchw, params, *, compute_dtype=jnp.bfloat16):
    """x_nchw: (N, Cin, H, W) f32 -> (N, num_classes, H, W) f32."""
    w1, bn_scale, bn_bias, w2, b2 = params
    N, Cin, H, W = x_nchw.shape
    Chid = w1.shape[-1]
    NC = w2.shape[-1]

    Wp = W + 2                      # width incl. the 1px left/right zero pad
    Lout = H * Wp                   # flattened output length (row stride Wp)
    halo = 2 * Wp + 2               # max forward tap offset (dy=dx=2)

    hb = 128                        # forward-halo block (power-of-two * 128)
    while hb < halo:
        hb *= 2
    tile = max(_pick_stripe(Lout, N), hb)
    n_stripes = _cdiv(Lout, tile)
    lout_pad = n_stripes * tile
    lin_pad = lout_pad + hb         # last halo block ends exactly at lin_pad
    r = tile // hb                  # halo block-index stride (exact: both 2^k*128)

    cin_pad = _round_up(Cin, 16)    # full bf16 sublane packing (16 rows/vreg)

    # ---- parameter prep (tiny, inference-time algebra) ----
    w1_folded = w1 * bn_scale                                    # (3,3,Cin,Chid)
    w1_t = jnp.transpose(w1_folded, (0, 1, 3, 2))                # (3,3,Chid,Cin)
    w1_t = jnp.pad(w1_t, ((0, 0), (0, 0), (0, 0), (0, cin_pad - Cin)))
    w1_t = w1_t.reshape(9, Chid, cin_pad).astype(compute_dtype)
    w2_t = jnp.transpose(w2, (1, 0)).astype(compute_dtype)       # (NC, Chid)
    b1_c = bn_bias.reshape(Chid, 1).astype(jnp.float32)
    b2_c = b2.reshape(NC, 1).astype(jnp.float32)

    # ---- input prep: cast to bf16 FIRST, pad, flatten (no 9x im2col) ----
    xb = x_nchw.astype(compute_dtype)
    xb = jnp.pad(xb, ((0, 0), (0, cin_pad - Cin), (1, 1), (1, 1)))  # (N,Cp,H+2,Wp)
    xf = xb.reshape(N, cin_pad, (H + 2) * Wp)
    xf = jnp.pad(xf, ((0, 0), (0, 0), (0, lin_pad - (H + 2) * Wp)))

    tap_off = tuple(dy * Wp + dx for dy in range(3) for dx in range(3))

    def kernel(xa_ref, xh_ref, w1_ref, b1_ref, w2_ref, b2_ref, out_ref, slab_ref):
        # xa_ref : (Cp, tile)      base input slice of this output stripe
        # xh_ref : (Cp, hb)        forward halo (next hb flattened elements)
        # slab_ref: (Cp, tile+hb)  VMEM scratch = [stripe | halo]
        slab_ref[:, :tile] = xa_ref[...]
        slab_ref[:, tile:] = xh_ref[...]
        # 3x3 conv (+ folded BN scale): nine accumulating K=Cin matmuls over
        # static contiguous tap slices of the slab; f32 MXU accumulation.
        hid = jnp.dot(w1_ref[0], slab_ref[:, 0:tile],
                      preferred_element_type=jnp.float32)
        for k in range(1, 9):
            o = tap_off[k]
            hid = hid + jnp.dot(w1_ref[k], slab_ref[:, o:o + tile],
                                preferred_element_type=jnp.float32)
        # BN bias + ReLU on the VPU in f32 (v5e has no bf16 VPU path).
        hid = jnp.maximum(hid + b1_ref[...], 0.0)
        # 1x1 conv = dense channel matmul + bias (bf16 operands, f32 acc).
        out = jnp.dot(w2_ref[...], hid.astype(w2_ref.dtype),
                      preferred_element_type=jnp.float32)
        out_ref[...] = (out + b2_ref[...]).astype(out_ref.dtype)

    # TODO(synk): per-chip tuning knobs -- v5e/v6e can lift vmem_limit_bytes to
    # 64-96 MiB and allow tile=2048 / pl.Buffered(3) on the streamed input;
    # v7x (64 MiB VMEM/TC) prefers tile<=1024 and pl.Buffered(1) on the
    # constant-weight specs, and could try fp8 stage-1 operands.
    out = pl.pallas_call(
        kernel,
        out_shape=jax.ShapeDtypeStruct((N, NC, lout_pad), jnp.float32),
        grid_spec=pltpu.PrefetchScalarGridSpec(
            num_scalar_prefetch=0,
            grid=(N, n_stripes),
            in_specs=[
                pl.BlockSpec((pl.Squeezed(), cin_pad, tile),
                             lambda n, s: (n, 0, s)),
                pl.BlockSpec((pl.Squeezed(), cin_pad, hb),
                             lambda n, s: (n, 0, (s + 1) * r)),
                pl.BlockSpec((9, Chid, cin_pad), lambda n, s: (0, 0, 0)),
                pl.BlockSpec((Chid, 1), lambda n, s: (0, 0)),
                pl.BlockSpec((NC, Chid), lambda n, s: (0, 0)),
                pl.BlockSpec((NC, 1), lambda n, s: (0, 0)),
            ],
            out_specs=pl.BlockSpec((pl.Squeezed(), NC, tile),
                                   lambda n, s: (n, 0, s)),
            scratch_shapes=[pltpu.VMEM((cin_pad, tile + hb), compute_dtype)],
        ),
        compiler_params=pltpu.CompilerParams(
            dimension_semantics=("parallel", "parallel"),
            vmem_limit_bytes=48 * 1024 * 1024,
        ),
    )(xf, xf, w1_t, b1_c, w2_t, b2_c)

    # (N, NC, H*(W+2)) is channel-major with row stride W+2: drop the stripe
    # padding, reshape, and drop the two garbage pad columns per row.
    return out[:, :, :Lout].reshape(N, NC, H, Wp)[:, :, :, :W]


def init_params(key, in_ch, hidden_ch, num_classes):
    """Deterministic synthetic parameters (no checkpoint loading)."""
    k1, k2, k3, k4, k5, k6, k7 = jax.random.split(key, 7)
    # 3x3 conv (bias=False, followed by BN), stored HWIO.
    w1 = jax.random.normal(k1, (3, 3, in_ch, hidden_ch), jnp.float32) * 0.1
    # BatchNorm2d(hidden_ch) inference-mode parameters, folded to scale/bias.
    gamma = 1.0 + 0.1 * jax.random.normal(k2, (hidden_ch,), jnp.float32)
    beta = 0.1 * jax.random.normal(k3, (hidden_ch,), jnp.float32)
    running_mean = 0.1 * jax.random.normal(k4, (hidden_ch,), jnp.float32)
    running_var = jnp.abs(jax.random.normal(k5, (hidden_ch,), jnp.float32)) + 1.0
    eps = 1e-5
    bn_scale = gamma / jnp.sqrt(running_var + eps)               # (Chid,)
    bn_bias = beta - running_mean * bn_scale                     # (Chid,)
    # 1x1 conv (with bias), stored as a (Chid, NC) dense matrix.
    w2 = jax.random.normal(k6, (hidden_ch, num_classes), jnp.float32) * 0.1
    b2 = 0.1 * jax.random.normal(k7, (num_classes,), jnp.float32)
    return (w1, bn_scale, bn_bias, w2, b2)


def reference(x_nchw, params, *, compute_dtype=jnp.bfloat16):
    """Pure-JAX reference (lax.conv) with the same bf16 operand quantization,
    so the check validates the conv lowering / tap indexing tightly."""
    w1, bn_scale, bn_bias, w2, b2 = params

    def q(a):
        return a.astype(compute_dtype).astype(jnp.float32)

    w1_folded = q(w1 * bn_scale)                                 # (3,3,Cin,Chid)
    h = lax.conv_general_dilated(
        q(x_nchw), w1_folded, window_strides=(1, 1), padding="SAME",
        dimension_numbers=("NCHW", "HWIO", "NCHW"))              # (N,Chid,H,W)
    h = jnp.maximum(h + bn_bias[None, :, None, None], 0.0)
    o = jnp.einsum("nchw,cd->ndhw", q(h), q(w2)) + b2[None, :, None, None]
    return o


if __name__ == "__main__":
    # Small synthetic shapes: batch=2, in_ch=4, hidden_ch=32, classes=8, 16x16.
    N, IN_CH, HID_CH, NUM_CLASSES, H, W = 2, 4, 32, 8, 16, 16

    key = jax.random.PRNGKey(0)
    kx, kp = jax.random.split(key)
    x = jax.random.normal(kx, (N, IN_CH, H, W), jnp.float32)
    params = init_params(kp, IN_CH, HID_CH, NUM_CLASSES)

    out = jax.block_until_ready(jax.jit(bisenetv2_head)(x, params))
    ref = jax.block_until_ready(reference(x, params))

    assert out.shape == (N, NUM_CLASSES, H, W), out.shape
    max_err = float(jnp.max(jnp.abs(out - ref)))
    # bf16 operands on both sides; residual diff is accumulation order plus
    # occasional 1-ulp bf16 rounding flips of the hidden activations.
    assert jnp.allclose(out, ref, atol=2e-2, rtol=2e-2), f"max_err={max_err}"

    print("KERNEL_OK")
</pallas_src>

<mosaic_0001>
module attributes {stable_mosaic.version = 11 : i64} {
  func.func @kernel(%arg0: i32, %arg1: i32, %arg2: memref<1x16x512xbf16, #tpu.memory_space<vmem>>, %arg3: memref<1x16x128xbf16, #tpu.memory_space<vmem>>, %arg4: memref<9x32x16xbf16, #tpu.memory_space<vmem>>, %arg5: memref<32x1xf32, #tpu.memory_space<vmem>>, %arg6: memref<8x32xbf16, #tpu.memory_space<vmem>>, %arg7: memref<8x1xf32, #tpu.memory_space<vmem>>, %arg8: memref<1x8x512xf32, #tpu.memory_space<vmem>>, %arg9: memref<16x640xbf16, #tpu.memory_space<vmem>>) attributes {dimension_semantics = [#tpu.dimension_semantics<parallel>, #tpu.dimension_semantics<parallel>], iteration_bounds = array<i64: 2, 1>, scalar_prefetch = 0 : i64, scratch_operands = 1 : i64, tpu.core_type = #tpu.core_type<tc>, window_params = [{transform_indices = @transform_0, window_bounds = array<i64: 1, 16, 512>}, {transform_indices = @transform_1, window_bounds = array<i64: 1, 16, 128>}, {pipeline_mode = #tpu.pipeline_mode<synchronous>, transform_indices = @transform_2, window_bounds = array<i64: 9, 32, 16>}, {pipeline_mode = #tpu.pipeline_mode<synchronous>, transform_indices = @transform_3, window_bounds = array<i64: 32, 1>}, {pipeline_mode = #tpu.pipeline_mode<synchronous>, transform_indices = @transform_4, window_bounds = array<i64: 8, 32>}, {pipeline_mode = #tpu.pipeline_mode<synchronous>, transform_indices = @transform_5, window_bounds = array<i64: 8, 1>}, {transform_indices = @transform_6, window_bounds = array<i64: 1, 8, 512>}]} {
    %c0 = arith.constant 0 : index
    %c0_0 = arith.constant 0 : index
    %c0_1 = arith.constant 0 : index
    %0 = vector.load %arg2[%c0, %c0_0, %c0_1] : memref<1x16x512xbf16, #tpu.memory_space<vmem>>, vector<1x16x512xbf16>
    %1 = vector.shape_cast %0 : vector<1x16x512xbf16> to vector<16x512xbf16>
    %c0_2 = arith.constant 0 : index
    %c0_3 = arith.constant 0 : index
    %2 = vector.load %arg9[%c0_2, %c0_3] : memref<16x640xbf16, #tpu.memory_space<vmem>>, vector<16x512xbf16>
    tpu.vector_store %arg9[%c0_2, %c0_3], %1 {strides = array<i32>} : memref<16x640xbf16, #tpu.memory_space<vmem>>, vector<16x512xbf16>,
    %c0_4 = arith.constant 0 : index
    %c0_5 = arith.constant 0 : index
    %c0_6 = arith.constant 0 : index
    %3 = vector.load %arg3[%c0_4, %c0_5, %c0_6] : memref<1x16x128xbf16, #tpu.memory_space<vmem>>, vector<1x16x128xbf16>
    %4 = vector.shape_cast %3 : vector<1x16x128xbf16> to vector<16x128xbf16>
    %c0_7 = arith.constant 0 : index
    %c512 = arith.constant 512 : index
    %5 = vector.load %arg9[%c0_7, %c512] : memref<16x640xbf16, #tpu.memory_space<vmem>>, vector<16x128xbf16>
    tpu.vector_store %arg9[%c0_7, %c512], %4 {strides = array<i32>} : memref<16x640xbf16, #tpu.memory_space<vmem>>, vector<16x128xbf16>,
    %c0_8 = arith.constant 0 : index
    %c0_9 = arith.constant 0 : index
    %c0_10 = arith.constant 0 : index
    %6 = vector.load %arg4[%c0_8, %c0_9, %c0_10] : memref<9x32x16xbf16, #tpu.memory_space<vmem>>, vector<1x32x16xbf16>
    %7 = vector.shape_cast %6 : vector<1x32x16xbf16> to vector<32x16xbf16>
    %c0_11 = arith.constant 0 : index
    %c0_12 = arith.constant 0 : index
    %8 = vector.load %arg9[%c0_11, %c0_12] : memref<16x640xbf16, #tpu.memory_space<vmem>>, vector<16x512xbf16>
    %cst = arith.constant dense<0.000000e+00> : vector<32x512xf32>
    %9 = tpu.matmul %7, %8, %cst {dimension_numbers = #tpu.dot_dimension_numbers<[1], [0], [0], [1], [0, 0, 1, 1], [], []>} : vector<32x16xbf16>, vector<16x512xbf16>, vector<32x512xf32> -> vector<32x512xf32>
    %c1 = arith.constant 1 : index
    %c0_13 = arith.constant 0 : index
    %c0_14 = arith.constant 0 : index
    %10 = vector.load %arg4[%c1, %c0_13, %c0_14] : memref<9x32x16xbf16, #tpu.memory_space<vmem>>, vector<1x32x16xbf16>
    %11 = vector.shape_cast %10 : vector<1x32x16xbf16> to vector<32x16xbf16>
    %c0_15 = arith.constant 0 : index
    %c1_16 = arith.constant 1 : index
    %12 = vector.load %arg9[%c0_15, %c1_16] : memref<16x640xbf16, #tpu.memory_space<vmem>>, vector<16x512xbf16>
    %cst_17 = arith.constant dense<0.000000e+00> : vector<32x512xf32>
    %13 = tpu.matmul %11, %12, %cst_17 {dimension_numbers = #tpu.dot_dimension_numbers<[1], [0], [0], [1], [0, 0, 1, 1], [], []>} : vector<32x16xbf16>, vector<16x512xbf16>, vector<32x512xf32> -> vector<32x512xf32>
    %14 = arith.addf %9, %13 : vector<32x512xf32>
    %c2 = arith.constant 2 : index
    %c0_18 = arith.constant 0 : index
    %c0_19 = arith.constant 0 : index
    %15 = vector.load %arg4[%c2, %c0_18, %c0_19] : memref<9x32x16xbf16, #tpu.memory_space<vmem>>, vector<1x32x16xbf16>
    %16 = vector.shape_cast %15 : vector<1x32x16xbf16> to vector<32x16xbf16>
    %c0_20 = arith.constant 0 : index
    %c2_21 = arith.constant 2 : index
    %17 = vector.load %arg9[%c0_20, %c2_21] : memref<16x640xbf16, #tpu.memory_space<vmem>>, vector<16x512xbf16>
    %cst_22 = arith.constant dense<0.000000e+00> : vector<32x512xf32>
    %18 = tpu.matmul %16, %17, %cst_22 {dimension_numbers = #tpu.dot_dimension_numbers<[1], [0], [0], [1], [0, 0, 1, 1], [], []>} : vector<32x16xbf16>, vector<16x512xbf16>, vector<32x512xf32> -> vector<32x512xf32>
    %19 = arith.addf %14, %18 : vector<32x512xf32>
    %c3 = arith.constant 3 : index
    %c0_23 = arith.constant 0 : index
    %c0_24 = arith.constant 0 : index
    %20 = vector.load %arg4[%c3, %c0_23, %c0_24] : memref<9x32x16xbf16, #tpu.memory_space<vmem>>, vector<1x32x16xbf16>
    %21 = vector.shape_cast %20 : vector<1x32x16xbf16> to vector<32x16xbf16>
    %c0_25 = arith.constant 0 : index
    %c18 = arith.constant 18 : index
    %22 = vector.load %arg9[%c0_25, %c18] : memref<16x640xbf16, #tpu.memory_space<vmem>>, vector<16x512xbf16>
    %cst_26 = arith.constant dense<0.000000e+00> : vector<32x512xf32>
    %23 = tpu.matmul %21, %22, %cst_26 {dimension_numbers = #tpu.dot_dimension_numbers<[1], [0], [0], [1], [0, 0, 1, 1], [], []>} : vector<32x16xbf16>, vector<16x512xbf16>, vector<32x512xf32> -> vector<32x512xf32>
    %24 = arith.addf %19, %23 : vector<32x512xf32>
    %c4 = arith.constant 4 : index
    %c0_27 = arith.constant 0 : index
    %c0_28 = arith.constant 0 : index
    %25 = vector.load %arg4[%c4, %c0_27, %c0_28] : memref<9x32x16xbf16, #tpu.memory_space<vmem>>, vector<1x32x16xbf16>
    %26 = vector.shape_cast %25 : vector<1x32x16xbf16> to vector<32x16xbf16>
    %c0_29 = arith.constant 0 : index
    %c19 = arith.constant 19 : index
    %27 = vector.load %arg9[%c0_29, %c19] : memref<16x640xbf16, #tpu.memory_space<vmem>>, vector<16x512xbf16>
    %cst_30 = arith.constant dense<0.000000e+00> : vector<32x512xf32>
    %28 = tpu.matmul %26, %27, %cst_30 {dimension_numbers = #tpu.dot_dimension_numbers<[1], [0], [0], [1], [0, 0, 1, 1], [], []>} : vector<32x16xbf16>, vector<16x512xbf16>, vector<32x512xf32> -> vector<32x512xf32>
    %29 = arith.addf %24, %28 : vector<32x512xf32>
    %c5 = arith.constant 5 : index
    %c0_31 = arith.constant 0 : index
    %c0_32 = arith.constant 0 : index
    %30 = vector.load %arg4[%c5, %c0_31, %c0_32] : memref<9x32x16xbf16, #tpu.memory_space<vmem>>, vector<1x32x16xbf16>
    %31 = vector.shape_cast %30 : vector<1x32x16xbf16> to vector<32x16xbf16>
    %c0_33 = arith.constant 0 : index
    %c20 = arith.constant 20 : index
    %32 = vector.load %arg9[%c0_33, %c20] : memref<16x640xbf16, #tpu.memory_space<vmem>>, vector<16x512xbf16>
    %cst_34 = arith.constant dense<0.000000e+00> : vector<32x512xf32>
    %33 = tpu.matmul %31, %32, %cst_34 {dimension_numbers = #tpu.dot_dimension_numbers<[1], [0], [0], [1], [0, 0, 1, 1], [], []>} : vector<32x16xbf16>, vector<16x512xbf16>, vector<32x512xf32> -> vector<32x512xf32>
    %34 = arith.addf %29, %33 : vector<32x512xf32>
    %c6 = arith.constant 6 : index
    %c0_35 = arith.constant 0 : index
    %c0_36 = arith.constant 0 : index
    %35 = vector.load %arg4[%c6, %c0_35, %c0_36] : memref<9x32x16xbf16, #tpu.memory_space<vmem>>, vector<1x32x16xbf16>
    %36 = vector.shape_cast %35 : vector<1x32x16xbf16> to vector<32x16xbf16>
    %c0_37 = arith.constant 0 : index
    %c36 = arith.constant 36 : index
    %37 = vector.load %arg9[%c0_37, %c36] : memref<16x640xbf16, #tpu.memory_space<vmem>>, vector<16x512xbf16>
    %cst_38 = arith.constant dense<0.000000e+00> : vector<32x512xf32>
    %38 = tpu.matmul %36, %37, %cst_38 {dimension_numbers = #tpu.dot_dimension_numbers<[1], [0], [0], [1], [0, 0, 1, 1], [], []>} : vector<32x16xbf16>, vector<16x512xbf16>, vector<32x512xf32> -> vector<32x512xf32>
    %39 = arith.addf %34, %38 : vector<32x512xf32>
    %c7 = arith.constant 7 : index
    %c0_39 = arith.constant 0 : index
    %c0_40 = arith.constant 0 : index
    %40 = vector.load %arg4[%c7, %c0_39, %c0_40] : memref<9x32x16xbf16, #tpu.memory_space<vmem>>, vector<1x32x16xbf16>
    %41 = vector.shape_cast %40 : vector<1x32x16xbf16> to vector<32x16xbf16>
    %c0_41 = arith.constant 0 : index
    %c37 = arith.constant 37 : index
    %42 = vector.load %arg9[%c0_41, %c37] : memref<16x640xbf16, #tpu.memory_space<vmem>>, vector<16x512xbf16>
    %cst_42 = arith.constant dense<0.000000e+00> : vector<32x512xf32>
    %43 = tpu.matmul %41, %42, %cst_42 {dimension_numbers = #tpu.dot_dimension_numbers<[1], [0], [0], [1], [0, 0, 1, 1], [], []>} : vector<32x16xbf16>, vector<16x512xbf16>, vector<32x512xf32> -> vector<32x512xf32>
    %44 = arith.addf %39, %43 : vector<32x512xf32>
    %c8 = arith.constant 8 : index
    %c0_43 = arith.constant 0 : index
    %c0_44 = arith.constant 0 : index
    %45 = vector.load %arg4[%c8, %c0_43, %c0_44] : memref<9x32x16xbf16, #tpu.memory_space<vmem>>, vector<1x32x16xbf16>
    %46 = vector.shape_cast %45 : vector<1x32x16xbf16> to vector<32x16xbf16>
    %c0_45 = arith.constant 0 : index
    %c38 = arith.constant 38 : index
    %47 = vector.load %arg9[%c0_45, %c38] : memref<16x640xbf16, #tpu.memory_space<vmem>>, vector<16x512xbf16>
    %cst_46 = arith.constant dense<0.000000e+00> : vector<32x512xf32>
    %48 = tpu.matmul %46, %47, %cst_46 {dimension_numbers = #tpu.dot_dimension_numbers<[1], [0], [0], [1], [0, 0, 1, 1], [], []>} : vector<32x16xbf16>, vector<16x512xbf16>, vector<32x512xf32> -> vector<32x512xf32>
    %49 = arith.addf %44, %48 : vector<32x512xf32>
    %c0_47 = arith.constant 0 : index
    %c0_48 = arith.constant 0 : index
    %50 = vector.load %arg5[%c0_47, %c0_48] : memref<32x1xf32, #tpu.memory_space<vmem>>, vector<32x1xf32>
    %51 = vector.broadcast %50 : vector<32x1xf32> to vector<32x512xf32>
    %52 = arith.addf %49, %51 : vector<32x512xf32>
    %cst_49 = arith.constant 0.000000e+00 : f32
    %53 = vector.broadcast %cst_49 : f32 to vector<32x512xf32>
    %54 = arith.maximumf %52, %53 : vector<32x512xf32>
    %c0_50 = arith.constant 0 : index
    %c0_51 = arith.constant 0 : index
    %55 = vector.load %arg6[%c0_50, %c0_51] : memref<8x32xbf16, #tpu.memory_space<vmem>>, vector<8x32xbf16>
    %56 = arith.truncf %54 : vector<32x512xf32> to vector<32x512xbf16>
    %cst_52 = arith.constant dense<0.000000e+00> : vector<8x512xf32>
    %57 = tpu.matmul %55, %56, %cst_52 {dimension_numbers = #tpu.dot_dimension_numbers<[1], [0], [0], [1], [0, 0, 1, 1], [], []>} : vector<8x32xbf16>, vector<32x512xbf16>, vector<8x512xf32> -> vector<8x512xf32>
    %c0_53 = arith.constant 0 : index
    %c0_54 = arith.constant 0 : index
    %58 = vector.load %arg7[%c0_53, %c0_54] : memref<8x1xf32, #tpu.memory_space<vmem>>, vector<8x1xf32>
    %59 = vector.broadcast %58 : vector<8x1xf32> to vector<8x512xf32>
    %60 = arith.addf %57, %59 : vector<8x512xf32>
    %c0_55 = arith.constant 0 : index
    %c0_56 = arith.constant 0 : index
    %c0_57 = arith.constant 0 : index
    %61 = vector.load %arg8[%c0_55, %c0_56, %c0_57] : memref<1x8x512xf32, #tpu.memory_space<vmem>>, vector<1x8x512xf32>
    %62 = vector.shape_cast %61 : vector<1x8x512xf32> to vector<8x512xf32>
    %63 = vector.shape_cast %60 : vector<8x512xf32> to vector<1x8x512xf32>
    tpu.vector_store %arg8[%c0_55, %c0_56, %c0_57], %63 {strides = array<i32>} : memref<1x8x512xf32, #tpu.memory_space<vmem>>, vector<1x8x512xf32>,
    return
  }
  func.func @transform_0(%arg0: i32, %arg1: i32) -> (i32, i32, i32) {
    %c0_i32 = arith.constant 0 : i32
    %c0_i32_0 = arith.constant 0 : i32
    return %arg0, %c0_i32, %arg1 : i32, i32, i32
  }
  func.func @transform_1(%arg0: i32, %arg1: i32) -> (i32, i32, i32) {
    %c1_i32 = arith.constant 1 : i32
    %0 = arith.addi %arg1, %c1_i32 : i32
    %c4_i32 = arith.constant 4 : i32
    %1 = arith.muli %0, %c4_i32 : i32
    %c0_i32 = arith.constant 0 : i32
    %c0_i32_0 = arith.constant 0 : i32
    return %arg0, %c0_i32, %1 : i32, i32, i32
  }
  func.func @transform_2(%arg0: i32, %arg1: i32) -> (i32, i32, i32) {
    %c0_i32 = arith.constant 0 : i32
    %c0_i32_0 = arith.constant 0 : i32
    %c0_i32_1 = arith.constant 0 : i32
    %c0_i32_2 = arith.constant 0 : i32
    return %c0_i32, %c0_i32_0, %c0_i32_1 : i32, i32, i32
  }
  func.func @transform_3(%arg0: i32, %arg1: i32) -> (i32, i32) {
    %c0_i32 = arith.constant 0 : i32
    %c0_i32_0 = arith.constant 0 : i32
    %c0_i32_1 = arith.constant 0 : i32
    return %c0_i32, %c0_i32_0 : i32, i32
  }
  func.func @transform_4(%arg0: i32, %arg1: i32) -> (i32, i32) {
    %c0_i32 = arith.constant 0 : i32
    %c0_i32_0 = arith.constant 0 : i32
    %c0_i32_1 = arith.constant 0 : i32
    return %c0_i32, %c0_i32_0 : i32, i32
  }
  func.func @transform_5(%arg0: i32, %arg1: i32) -> (i32, i32) {
    %c0_i32 = arith.constant 0 : i32
    %c0_i32_0 = arith.constant 0 : i32
    %c0_i32_1 = arith.constant 0 : i32
    return %c0_i32, %c0_i32_0 : i32, i32
  }
  func.func @transform_6(%arg0: i32, %arg1: i32) -> (i32, i32, i32) {
    %c0_i32 = arith.constant 0 : i32
    %c0_i32_0 = arith.constant 0 : i32
    return %arg0, %c0_i32, %arg1 : i32, i32, i32
  }
}

</mosaic_0001>

<bundles_post_ra>
// kernel: bisenetv2_head.1
= control target key start
LH: loop header
LB: loop body
LE: loop exit
PB: predicated region body
PF: predicated region fallthrough
CT: control target
= control target key end

     0   :  { %s3066_s21 = smov 0   ;;  %s3068_s22 = smov 0   ;;  %s3365_s0 = inlined_call_operand.vmem [shape: bf16[2,16,640], index: 0, kind: input, shape index: {}, may-alias: {0,1}]   ;;  %s3366_s1 = inlined_call_operand.vmem [shape: bf16[2,16,640], index: 1, kind: input, shape index: {}, may-alias: {0,1}]   ;;  %s3367_s2 = inlined_call_operand.vmem [shape: bf16[9,32,16], index: 2, kind: input, shape index: {}]   ;;  %s3368_s3 = inlined_call_operand.vmem [shape: f32[32,1], index: 3, kind: input, shape index: {}]   ;;  %s3369_s4 = inlined_call_operand.vmem [shape: bf16[8,32], index: 4, kind: input, shape index: {}]   ;;  %s3370_s5 = inlined_call_operand.vmem [shape: f32[8,1], index: 5, kind: input, shape index: {}]   ;;  %s3371_s6 = inlined_call_operand.vmem [shape: f32[2,8,512], index: 6, kind: output, shape index: {}]  }
   0x1   :  { %s3070_s23 = smov 0   ;;  %s3072_s24 = smov 0  }
   0x2   :  { %s3074_s25 = smov 0  }
   0x3 LB: > { %s28_s26 = sadd.s32 1, %s3000_s24  ;;  %p44_p1 = scmp.ne.s32.totalorder %s2992_s22, %s2988_s21  ;;  %s3004_s25 = sphi %s3074_s25, %s16_s25   ;;  %s3000_s24 = sphi %s3072_s24, %s3376_s24   ;;  %s2996_s23 = sphi %s3070_s23, %s3375_s23   ;;  %s2992_s22 = sphi %s3068_s22, %s3374_s22   ;;  %s2988_s21 = sphi %s3066_s21, %s3373_s21  }
   0x4   : > { %p30_p0 = scmp.ge.s32.totalorder %s28_s26, 2  ;;  %p45_p2 = scmp.eq.s32.totalorder %s3004_s25, 0 }
   0x5   : > { %s37_s29 = sadd.s32 1, %s2992_s22  ;;  %p2595_p5 = scmp.ge.s32.totalorder %s3004_s25, 2 }
   0x6   : > { %s3378_s26 = smov (%p30_p0, %s28_s26), 0  ;;  %p3097_p3 = por %p45_p2, %p44_p1 }
   0x7   : > { %s32_s28 = ssub.s32 %s3000_s24, %s3378_s26  ;;  %226 = sbr.rel (%p2595_p5) target bundleno = 38 (0x26), region = 32 }
   0x8   : > { %p35_p4 = scmp.eq.s32.totalorder %s32_s28, 0 }
   0xa   : > { %s3105_s30 = scalar_select %p35_p4, %s2992_s22, %s37_s29  }
   0xe   : > { %229 = sbr.rel (!%p3097_p3) target bundleno = 31 (0x1f), region = 36  ;;  %s231_s7 = sand.u32 (%p3097_p3), 1, %s2992_s22  }
   0xf   : > { %s2841_s8 = smul.u32 (%p3097_p3), 40, %s3000_s24  ;;  %s2596_s9 = sshll.u32 (%p3097_p3), %s231_s7, 5 }
  0x10   : > { %s233_s13 = scalar_lea.vmem (%p3097_p3), [#allocation3], %s2596_s9   ;;  %s3014_s16 = smov (%p3097_p3), 0  }
  0x11   : > { %s243_s12 = scalar_lea.vmem (%p3097_p3), %s3365_s0, %s2841_s8   ;;  %s3006_s14 = smov (%p3097_p3), %s233_s13  }
  0x12   : > { %s3010_s15 = smov (%p3097_p3), %s243_s12   ;;  %s3018_s17 = smov (%p3097_p3), 0  }
  0x15 LB: >> { %v441_v0 = vld [vmem:[%s3012_s15] sm:$0xff]  ;;  %v443_v1 = vld [vmem:[%s3012_s15 + $0x14] sm:$0xff]  ;;  %s445_s18 = sadd.s32 1, %s3016_s16  ;;  %s435_s17 = sadd.s32 1, %s3020_s17   ;;  %s3020_s17 = sphi %s3018_s17, %s435_s17   ;;  %s3016_s16 = sphi %s3014_s16, %s3015_s16   ;;  %s3012_s15 = sphi %s3010_s15, %s450_s15   ;;  %s3008_s14 = sphi %s3006_s14, %s451_s14  }
  0x16   : >> { %442 = vst [vmem:[%s3008_s14] sm:$0xff] %v441_v0  ;;  %444 = vst [vmem:[%s3008_s14 + $0x10] sm:$0xff] %v443_v1  ;;  %p446_p6 = scmp.ge.s32.totalorder %s445_s18, 2  ;;  %p434_p7 = scmp.ge.s32.totalorder %s435_s17, 2 }
  0x18   : >> { %s3380_s18 = smov (%p446_p6, %s445_s18), 0  ;;  %437 = sbr.rel (!%p434_p7) target bundleno = 21 (0x15), region = 231 }
  0x19   : >> { %s2600_s19 = sshll.u32 %s3380_s18, 3  ;;  %s3015_s16 = smov %s3380_s18  }
  0x1a   : >> { %s450_s15 = scalar_lea.vmem %s243_s12, %s2600_s19   ;;  %s451_s14 = scalar_lea.vmem %s233_s13, %s2600_s19 [#allocation3]  }
  0x1f PF: > { %655 = sbr.rel (!%p3097_p3) target bundleno = 38 (0x26), region = 102  ;;  %s657_s20 = sand.u32 (%p3097_p3), 1, %s2992_s22  }
  0x20   : > { %s2609_s28 = smul.u32 (%p3097_p3), 40, %s3000_s24  ;;  %s2608_s29 = sshll.u32 (%p3097_p3), %s657_s20, 3 }
  0x21   : > { %s659_s10 = scalar_lea.vmem (%p3097_p3), [#allocation4], %s2608_s29 }
  0x22   : > { %s2463_s9 = scalar_lea.vmem (%p3097_p3), %s3366_s1, %s2609_s28 }
  0x23   : > { %v2610_v2 = vld [vmem:[%s2463_s9 + $0x10] sm:$0xf] (%p3097_p3)  ;;  %v2611_v3 = vld [vmem:[%s2463_s9 + $0x24] sm:$0xf] (%p3097_p3) }
  0x24   : > { %682 = vst [vmem:[%s659_s10] sm:$0xf] (%p3097_p3), %v2610_v2  ;;  %684 = vst [vmem:[%s659_s10 + $0x4] sm:$0xf] (%p3097_p3), %v2611_v3 }
  0x26 PF: > { %p2612_p8 = scmp.ge.s32.totalorder %s3004_s25, 1  ;;  %p710_p9 = scmp.lt.s32.totalorder %s3004_s25, 3 }
  0x28   : > { %p711_p10 = pnand %p2612_p8, %p710_p9 }
  0x29   : > { %s717_s27 = sand.u32 (!%p711_p10), 1, %s2988_s21   ;;  %v3022_v4 = vmov (!%p711_p10), 0   ;;  %s3023_s14 = smov (!%p711_p10), 127   ;;  %vm859_vm0 = vcmask (!%p711_p10), 1039360   ;;  %v2932_v17 = vld [vmem:[%s3367_s2 + $0x10] sm:$0xff] (!%p711_p10)   ;;  %vm868_vm1 = vcmask (!%p711_p10), 130048  }
  0x2a   : > { %714 = sbr.rel (%p711_p10) target bundleno = 749 (0x2ed), region = 143  ;;  %s2613_s11 = sshll.u32 (!%p711_p10), %s717_s27, 5  ;;  %960 = vmatprep.mubr.bf16.mxu1 (!%p711_p10), %v3022_v4  ;;  %907 = vmatprep.mubr.bf16.mxu0 (!%p711_p10), %v3022_v4  ;;  %vm1128_vm2 = vcmask (!%p711_p10), 1031168   ;;  %v2933_v23 = vld [vmem:[%s3367_s2 + $0x18] sm:$0xff] (!%p711_p10)   ;;  %v2934_v30 = vld [vmem:[%s3367_s2] sm:$0xff] (!%p711_p10)   ;;  %v2238_v31 = vld [vmem:[%s3368_s3 + $0x8] sm:$0xff] (!%p711_p10) }
  0x2b   : > { %s2614_s12 = sshll.u32 (!%p711_p10), %s717_s27, 3  ;;  %2924 = vset.pattern.permute.xlu1 (!%p711_p10), %v3022_v4  ;;  %2923 = vset.pattern.permute.xlu0 (!%p711_p10), %v3022_v4  ;;  %s719_s13 = scalar_lea.vmem (!%p711_p10), [#allocation3], %s2613_s11  ;;  %v2237_v32 = vld [vmem:[%s3368_s3] sm:$0xff] (!%p711_p10)  ;;  %vm1290_vm3 = vcmask (!%p711_p10), 900096   ;;  %v2239_v36 = vld [vmem:[%s3368_s3 + $0x10] sm:$0xff] (!%p711_p10)  ;;  %v2240_v38 = vld [vmem:[%s3368_s3 + $0x18] sm:$0xff] (!%p711_p10) }
  0x2c   : > { %v3129_v5 = vld [vmem:[%s719_s13 + $0xc] ss:$16 sps:$4 sm:$0xff] (!%p711_p10)   ;;  %v3131_v6 = vld [vmem:[%s719_s13 + $0x4] ss:$16 sps:$4 sm:$0xff] (!%p711_p10)   ;;  %s726_s21 = scalar_lea.vmem (!%p711_p10), [#allocation4], %s2614_s12  ;;  %s3024_s15 = smov (!%p711_p10), 126  }
  0x2d   : > { %855 = vrot.lane.b32.xlu1 (!%p711_p10), %v3129_v5, %s3023_s14  ;;  %v2929_v7 = vld [vmem:[%s726_s21] sm:$0xff] (!%p711_p10)   ;;  %851 = vrot.lane.b32.xlu0 (!%p711_p10), %v3131_v6, %s3023_s14  ;;  %s3025_s16 = smov (!%p711_p10), 110   ;;  %s3026_s17 = smov (!%p711_p10), 109   ;;  %vm1452_vm4 = vcmask (!%p711_p10), 891904   ;;  %v2938_v57 = vld [vmem:[%s3367_s2 + $0x30] sm:$0xff] (!%p711_p10)   ;;  %vm1614_vm5 = vcmask (!%p711_p10), 883712  }
  0x2e   : > { %v3135_v8 = vld [vmem:[%s719_s13 + $0x8] ss:$16 sps:$4 sm:$0xff] (!%p711_p10)   ;;  %v3137_v9 = vld [vmem:[%s719_s13] ss:$16 sps:$4 sm:$0xff] (!%p711_p10)   ;;  %s3027_s18 = smov (!%p711_p10), 108   ;;  %s3028_s19 = smov (!%p711_p10), 92  }
  0x2f   : > { %s3029_s20 = smov (!%p711_p10), 91   ;;  %s3030_s28 = smov (!%p711_p10), 90   ;;  %v2302_v42 = vld [vmem:[%s3370_s5] sm:$0xff] (!%p711_p10)  ;;  %v2935_v43 = vld [vmem:[%s3367_s2 + $0x8] sm:$0xff] (!%p711_p10)   ;;  %v2939_v1 = vld [vmem:[%s3367_s2 + $0x38] sm:$0xff] (!%p711_p10)   ;;  %vm1776_vm6 = vcmask (!%p711_p10), 752640  }
  0x30   : > { %v2936_v46 = vld [vmem:[%s3367_s2 + $0x20] sm:$0xff] (!%p711_p10)   ;;  %v2937_v54 = vld [vmem:[%s3367_s2 + $0x28] sm:$0xff] (!%p711_p10)   ;;  %vm1938_vm7 = vcmask (!%p711_p10), 744448   ;;  %vm2100_vm8 = vcmask (!%p711_p10), 736256   ;;  %vm2308_vm9 = vcmask (!%p711_p10), 261120   ;;  %p769_p11 = scmp.lt.s32.totalorder (!%p711_p10), %s2996_s23, 1 }
  0x31   : > { %857 = vrot.lane.b32.xlu1 %v2929_v7, %s3023_s14  ;;  %853 = vrot.lane.b32.xlu0 %v3135_v8, %s3023_s14 }
  0x32   : > { %s3382_s23 = smov (!%p769_p11, %s2996_s23), 1 }
  0x35   : > { %1120 = vrot.lane.b32.xlu1 %v3131_v6, %s3024_s15  ;;  %849 = vrot.lane.b32.xlu0 %v3137_v9, %s3023_s14 }
  0x39   : > { %1124 = vrot.lane.b32.xlu1 %v3129_v5, %s3024_s15  ;;  %1122 = vrot.lane.b32.xlu0 %v3135_v8, %s3024_s15 }
  0x3d   : > { %1118 = vrot.lane.b32.xlu1 %v3137_v9, %s3024_s15  ;;  %1126 = vrot.lane.b32.xlu0 %v2929_v7, %s3024_s15 }
  0x41   : > { %1284 = vrot.lane.b32.xlu1 %v3135_v8, %s3025_s16  ;;  %1282 = vrot.lane.b32.xlu0 %v3131_v6, %s3025_s16 }
  0x45   : > { %1288 = vrot.lane.b32.xlu1 %v2929_v7, %s3025_s16  ;;  %1286 = vrot.lane.b32.xlu0 %v3129_v5, %s3025_s16 }
  0x49   : > { %1444 = vrot.lane.b32.xlu1 %v3131_v6, %s3026_s17  ;;  %1280 = vrot.lane.b32.xlu0 %v3137_v9, %s3025_s16  ;;  %s2712_s16 = sshll.u32 %s3382_s23, 5 }
  0x4d   : > { %1448 = vrot.lane.b32.xlu1 %v3129_v5, %s3026_s17  ;;  %1446 = vrot.lane.b32.xlu0 %v3135_v8, %s3026_s17 }
  0x51   : > { %1442 = vrot.lane.b32.xlu1 %v3137_v9, %s3026_s17  ;;  %1450 = vrot.lane.b32.xlu0 %v2929_v7, %s3026_s17 }
  0x55   : > { %1608 = vrot.lane.b32.xlu1 %v3135_v8, %s3027_s18  ;;  %1606 = vrot.lane.b32.xlu0 %v3131_v6, %s3027_s18 }
  0x59   : > { %1612 = vrot.lane.b32.xlu1 %v2929_v7, %s3027_s18  ;;  %1610 = vrot.lane.b32.xlu0 %v3129_v5, %s3027_s18 }
  0x5d   : > { %1768 = vrot.lane.b32.xlu1 %v3131_v6, %s3028_s19  ;;  %1604 = vrot.lane.b32.xlu0 %v3137_v9, %s3027_s18 }
  0x61   : > { %1772 = vrot.lane.b32.xlu1 %v3129_v5, %s3028_s19  ;;  %1770 = vrot.lane.b32.xlu0 %v3135_v8, %s3028_s19 }
  0x65   : > { %1766 = vrot.lane.b32.xlu1 %v3137_v9, %s3028_s19  ;;  %1774 = vrot.lane.b32.xlu0 %v2929_v7, %s3028_s19  ;;  %s776_s19 = scalar_lea.vmem %s3371_s6, %s2712_s16 }
  0x69   : > { %1932 = vrot.lane.b32.xlu1 %v3135_v8, %s3029_s20  ;;  %1930 = vrot.lane.b32.xlu0 %v3131_v6, %s3029_s20 }
  0x6d   : > { %1936 = vrot.lane.b32.xlu1 %v2929_v7, %s3029_s20  ;;  %1934 = vrot.lane.b32.xlu0 %v3129_v5, %s3029_s20 }
  0x71   : > { %2092 = vrot.lane.b32.xlu1 %v3131_v6, %s3030_s28  ;;  %1928 = vrot.lane.b32.xlu0 %v3137_v9, %s3029_s20 }
  0x75   : > { %2096 = vrot.lane.b32.xlu1 %v3129_v5, %s3030_s28  ;;  %2094 = vrot.lane.b32.xlu0 %v3135_v8, %s3030_s28 }
  0x79   : > { %2090 = vrot.lane.b32.xlu1 %v3137_v9, %s3030_s28  ;;  %2098 = vrot.lane.b32.xlu0 %v2929_v7, %s3030_s28 }
  0x7d   : > { %2248 = vperm.xlu1 %2924, %v2238_v31   ;;  %2243 = vperm.xlu0 %2923, %v2237_v32  }
  0x81   : > { %2253 = vperm.xlu1 %2924, %v2239_v36   ;;  %2258 = vperm.xlu0 %2923, %v2240_v38  }
  0x85   : > { %2305 = vperm.xlu1 %2924, %v2302_v42  }
  0x9f   : > { %v856_v10 = vpop.permute.xlu1 %855  ;;  %v852_v11 = vpop.permute.xlu0 %851 }
  0xa3   : > { %v858_v12 = vpop.permute.xlu1 %857  ;;  %v854_v13 = vpop.permute.xlu0 %853 }
  0xa4   : > { %v863_v14 = vsel %vm859_vm0, %v856_v10, %v858_v12  ;;  %v861_v15 = vsel %vm859_vm0, %v852_v11, %v854_v13  ;;  %v862_v16 = vsel %vm859_vm0, %v854_v13, %v856_v10  ;;  %v2941_v13 = vld [vmem:[%s3367_s2 + $0x48] sm:$0xff]  }
  0xa5   : > { %928 = vmatprep.subr.bf16.mxu1 %v863_v14  ;;  %875 = vmatprep.subr.bf16.mxu0 %v861_v15 }
  0xa6   : > { %929 = vmatpush1.bf16.msra.mxu1 %v862_v16  ;;  %v2942_v16 = vld [vmem:[%s3367_s2 + $0x50] sm:$0xff]  }
  0xa7   : > { %v1121_v18 = vpop.permute.xlu1 %1120  ;;  %1050 = vmatprep.subr.bf16.mxu1 %v3129_v5  ;;  %v850_v19 = vpop.permute.xlu0 %849  ;;  %v2940_v5 = vld [vmem:[%s3367_s2 + $0x40] sm:$0xff]  }
  0xa8   : > { %v860_v20 = vsel %vm859_vm0, %v850_v19, %v852_v11 }
  0xa9   : > { %2630 = vmatmul.mubr.msk.bf16.vlgmr.msra.gmra.mrb[0].mxu1 %vm868_vm1, %v2932_v17  ;;  %876 = vmatpush1.bf16.msra.mxu0 %v860_v20 }
  0xaa   : > { %970 = vmatprep.mubr.bf16.mxu1 %v3022_v4  ;;  %997 = vmatprep.subr.bf16.mxu0 %v3131_v6 }
  0xab   : > { %1051 = vmatpush1.bf16.msra.mxu1 %v3135_v8  ;;  %v1125_v21 = vpop.permute.xlu1 %1124  ;;  %v1123_v22 = vpop.permute.xlu0 %1122 }
  0xac   : > { %2628 = vmatmul.mubr.msk.bf16.vlgmr.msra.gmra.mrb[0].mxu0 %vm868_vm1, %v2932_v17  ;;  %v1130_v24 = vsel %vm1128_vm2, %v1121_v18, %v1123_v22  ;;  %v1131_v33 = vsel %vm1128_vm2, %v1123_v22, %v1125_v21 }
  0xad   : > { %998 = vmatpush1.bf16.msra.mxu0 %v3137_v9  ;;  %917 = vmatprep.mubr.bf16.mxu0 %v3022_v4 }
  0xae   : > { %1143 = vmatprep.subr.bf16.mxu0 %v1130_v24  ;;  %v2943_v24 = vld [vmem:[%s3367_s2 + $0x58] sm:$0xff]  }
  0xaf   : > { %v1119_v25 = vpop.permute.xlu1 %1118  ;;  %v1127_v26 = vpop.permute.xlu0 %1126 }
  0xb0   : > { %v1132_v27 = vsel %vm1128_vm2, %v1125_v21, %v1127_v26  ;;  %v1129_v39 = vsel %vm1128_vm2, %v1119_v25, %v1121_v18 }
  0xb1   : > { %2631 = vmatmul.mubr.msk.bf16.gmra.mrb[4].mxu1 %vm868_vm1, %v2933_v23  ;;  %1196 = vmatprep.subr.bf16.mxu1 %v1132_v27  ;;  %v2944_v27 = vld [vmem:[%s3367_s2 + $0x60] sm:$0xff]  }
  0xb2   : > { %1082 = vmatprep.mubr.bf16.mxu1 %v3022_v4 }
  0xb3   : > { %v1285_v28 = vpop.permute.xlu1 %1284  ;;  %v1283_v29 = vpop.permute.xlu0 %1282 }
  0xb4   : > { %2629 = vmatmul.mubr.msk.bf16.gmra.mrb[4].mxu0 %vm868_vm1, %v2933_v23  ;;  %v1292_v41 = vsel %vm1290_vm3, %v1283_v29, %v1285_v28 }
  0xb5   : > { %1029 = vmatprep.mubr.bf16.mxu0 %v3022_v4 }
  0xb7   : > { %v1289_v34 = vpop.permute.xlu1 %1288  ;;  %v1287_v35 = vpop.permute.xlu0 %1286 }
  0xb8   : > { %v1294_v37 = vsel %vm1290_vm3, %v1287_v35, %v1289_v34  ;;  %v1293_v49 = vsel %vm1290_vm3, %v1285_v28, %v1287_v35  ;;  %v2945_v34 = vld [vmem:[%s3367_s2 + $0x68] sm:$0xff]   ;;  %v2946_v35 = vld [vmem:[%s3367_s2 + $0x70] sm:$0xff]  }
  0xb9   : > { %2636 = vmatmul.mubr.msk.bf16.vlgmr.msra.gmra.mrb[0].mxu1 %vm868_vm1, %v2934_v30 }
  0xba   : > { %1197 = vmatpush1.bf16.msra.mxu1 %v1131_v33  ;;  %1092 = vmatprep.mubr.bf16.mxu1 %v3022_v4 }
  0xbb   : > { %1358 = vmatprep.subr.bf16.mxu1 %v1294_v37  ;;  %v1281_v40 = vpop.permute.xlu0 %1280  ;;  %v1445_v44 = vpop.permute.xlu1 %1444 }
  0xbc   : > { %2634 = vmatmul.mubr.msk.bf16.vlgmr.msra.gmra.mrb[0].mxu0 %vm868_vm1, %v2934_v30  ;;  %v1291_v51 = vsel %vm1290_vm3, %v1281_v40, %v1283_v29  ;;  %v2948_v40 = vld [vmem:[%s3367_s2 + $0x80] sm:$0xff]  }
  0xbd   : > { %1144 = vmatpush1.bf16.msra.mxu0 %v1129_v39  ;;  %1039 = vmatprep.mubr.bf16.mxu0 %v3022_v4  ;;  %v2947_v39 = vld [vmem:[%s3367_s2 + $0x78] sm:$0xff]  }
  0xbe   : > { %1305 = vmatprep.subr.bf16.mxu0 %v1292_v41  ;;  %v2949_v41 = vld [vmem:[%s3367_s2 + $0x88] sm:$0xff]  }
  0xbf   : > { %v1447_v45 = vpop.permute.xlu0 %1446  ;;  %v1449_v47 = vpop.permute.xlu1 %1448 }
  0xc0   : > { %v1454_v53 = vsel %vm1452_vm4, %v1445_v44, %v1447_v45  ;;  %v1455_v60 = vsel %vm1452_vm4, %v1447_v45, %v1449_v47 }
  0xc1   : > { %2637 = vmatmul.mubr.msk.bf16.gmra.mrb[4].mxu1 %vm868_vm1, %v2935_v43 }
  0xc2   : > { %1228 = vmatprep.mubr.bf16.mxu1 %v3022_v4 }
  0xc3   : > { %v1451_v48 = vpop.permute.xlu0 %1450  ;;  %v1443_v52 = vpop.permute.xlu1 %1442 }
  0xc4   : > { %2635 = vmatmul.mubr.msk.bf16.gmra.mrb[4].mxu0 %vm868_vm1, %v2935_v43  ;;  %v1456_v50 = vsel %vm1452_vm4, %v1449_v47, %v1451_v48  ;;  %v1453_v62 = vsel %vm1452_vm4, %v1443_v52, %v1445_v44 }
  0xc5   : > { %1175 = vmatprep.mubr.bf16.mxu0 %v3022_v4 }
  0xc7   : > { %v1607_v55 = vpop.permute.xlu0 %1606  ;;  %v1609_v56 = vpop.permute.xlu1 %1608 }
  0xc8   : > { %v1616_v0 = vsel %vm1614_vm5, %v1607_v55, %v1609_v56 }
  0xc9   : > { %2646 = vmatmul.mubr.msk.bf16.vlgmr.msra.gmra.mrb[0].mxu1 %vm868_vm1, %v2936_v46 }
  0xca   : > { %1359 = vmatpush1.bf16.msra.mxu1 %v1293_v49  ;;  %1238 = vmatprep.mubr.bf16.mxu1 %v3022_v4 }
  0xcb   : > { %1520 = vmatprep.subr.bf16.mxu1 %v1456_v50  ;;  %v1611_v58 = vpop.permute.xlu0 %1610  ;;  %v1613_v59 = vpop.permute.xlu1 %1612 }
  0xcc   : > { %2644 = vmatmul.mubr.msk.bf16.vlgmr.msra.gmra.mrb[0].mxu0 %vm868_vm1, %v2936_v46  ;;  %v1618_v61 = vsel %vm1614_vm5, %v1611_v58, %v1613_v59  ;;  %v1617_v8 = vsel %vm1614_vm5, %v1609_v56, %v1611_v58 }
  0xcd   : > { %1306 = vmatpush1.bf16.msra.mxu0 %v1291_v51  ;;  %1185 = vmatprep.mubr.bf16.mxu0 %v3022_v4 }
  0xce   : > { %1467 = vmatprep.subr.bf16.mxu0 %v1454_v53 }
  0xcf   : > { %v1605_v63 = vpop.permute.xlu0 %1604  ;;  %v1769_v2 = vpop.permute.xlu1 %1768 }
  0xd0   : > { %v1615_v10 = vsel %vm1614_vm5, %v1605_v63, %v1607_v55 }
  0xd1   : > { %2647 = vmatmul.mubr.msk.bf16.gmra.mrb[4].mxu1 %vm868_vm1, %v2937_v54 }
  0xd2   : > { %1390 = vmatprep.mubr.bf16.mxu1 %v3022_v4 }
  0xd3   : > { %v1771_v3 = vpop.permute.xlu0 %1770  ;;  %v1773_v6 = vpop.permute.xlu1 %1772 }
  0xd4   : > { %2645 = vmatmul.mubr.msk.bf16.gmra.mrb[4].mxu0 %vm868_vm1, %v2937_v54  ;;  %v1778_v12 = vsel %vm1776_vm6, %v1769_v2, %v1771_v3  ;;  %v1779_v19 = vsel %vm1776_vm6, %v1771_v3, %v1773_v6 }
  0xd5   : > { %1337 = vmatprep.mubr.bf16.mxu0 %v3022_v4 }
  0xd7   : > { %v1775_v7 = vpop.permute.xlu0 %1774  ;;  %v1767_v11 = vpop.permute.xlu1 %1766 }
  0xd8   : > { %v1780_v9 = vsel %vm1776_vm6, %v1773_v6, %v1775_v7  ;;  %v1777_v21 = vsel %vm1776_vm6, %v1767_v11, %v1769_v2 }
  0xd9   : > { %2656 = vmatmul.mubr.msk.bf16.vlgmr.msra.gmra.mrb[0].mxu1 %vm868_vm1, %v2938_v57 }
  0xda   : > { %1521 = vmatpush1.bf16.msra.mxu1 %v1455_v60  ;;  %1400 = vmatprep.mubr.bf16.mxu1 %v3022_v4 }
  0xdb   : > { %1682 = vmatprep.subr.bf16.mxu1 %v1618_v61  ;;  %v1931_v14 = vpop.permute.xlu0 %1930  ;;  %v1933_v15 = vpop.permute.xlu1 %1932 }
  0xdc   : > { %2654 = vmatmul.mubr.msk.bf16.vlgmr.msra.gmra.mrb[0].mxu0 %vm868_vm1, %v2938_v57  ;;  %v1940_v23 = vsel %vm1938_vm7, %v1931_v14, %v1933_v15 }
  0xdd   : > { %1468 = vmatpush1.bf16.msra.mxu0 %v1453_v62  ;;  %1347 = vmatprep.mubr.bf16.mxu0 %v3022_v4 }
  0xde   : > { %1629 = vmatprep.subr.bf16.mxu0 %v1616_v0 }
  0xdf   : > { %v1935_v17 = vpop.permute.xlu0 %1934  ;;  %v1937_v18 = vpop.permute.xlu1 %1936 }
  0xe0   : > { %v1942_v20 = vsel %vm1938_vm7, %v1935_v17, %v1937_v18  ;;  %v1941_v29 = vsel %vm1938_vm7, %v1933_v15, %v1935_v17 }
  0xe1   : > { %2657 = vmatmul.mubr.msk.bf16.gmra.mrb[4].mxu1 %vm868_vm1, %v2939_v1 }
  0xe2   : > { %1552 = vmatprep.mubr.bf16.mxu1 %v3022_v4 }
  0xe3   : > { %v1929_v22 = vpop.permute.xlu0 %1928  ;;  %v2093_v26 = vpop.permute.xlu1 %2092 }
  0xe4   : > { %2655 = vmatmul.mubr.msk.bf16.gmra.mrb[4].mxu0 %vm868_vm1, %v2939_v1  ;;  %v1939_v32 = vsel %vm1938_vm7, %v1929_v22, %v1931_v14 }
  0xe5   : > { %1499 = vmatprep.mubr.bf16.mxu0 %v3022_v4 }
  0xe7   : > { %v2095_v25 = vpop.permute.xlu0 %2094  ;;  %v2097_v30 = vpop.permute.xlu1 %2096 }
  0xe8   : > { %v2102_v33 = vsel %vm2100_vm8, %v2093_v26, %v2095_v25  ;;  %v2103_v36 = vsel %vm2100_vm8, %v2095_v25, %v2097_v30 }
  0xe9   : > { %2666 = vmatmul.mubr.msk.bf16.vlgmr.msra.gmra.mrb[0].mxu1 %vm868_vm1, %v2940_v5 }
  0xea   : > { %1683 = vmatpush1.bf16.msra.mxu1 %v1617_v8  ;;  %1562 = vmatprep.mubr.bf16.mxu1 %v3022_v4 }
  0xeb   : > { %1844 = vmatprep.subr.bf16.mxu1 %v1780_v9  ;;  %v2099_v28 = vpop.permute.xlu0 %2098  ;;  %v2091_v37 = vpop.permute.xlu1 %2090 }
  0xec   : > { %2664 = vmatmul.mubr.msk.bf16.vlgmr.msra.gmra.mrb[0].mxu0 %vm868_vm1, %v2940_v5  ;;  %v2104_v31 = vsel %vm2100_vm8, %v2097_v30, %v2099_v28  ;;  %v2101_v38 = vsel %vm2100_vm8, %v2091_v37, %v2093_v26  ;;  %v2293_v37 = vld [vmem:[%s3369_s4] sm:$0xf] }
  0xed   : > { %1630 = vmatpush1.bf16.msra.mxu0 %v1615_v10  ;;  %1509 = vmatprep.mubr.bf16.mxu0 %v3022_v4 }
  0xee   : > { %1791 = vmatprep.subr.bf16.mxu0 %v1778_v12 }
  0xf1   : > { %2667 = vmatmul.mubr.msk.bf16.gmra.mrb[4].mxu1 %vm868_vm1, %v2941_v13 }
  0xf2   : > { %1714 = vmatprep.mubr.bf16.mxu1 %v3022_v4 }
  0xf4   : > { %2665 = vmatmul.mubr.msk.bf16.gmra.mrb[4].mxu0 %vm868_vm1, %v2941_v13 }
  0xf5   : > { %1661 = vmatprep.mubr.bf16.mxu0 %v3022_v4 }
  0xf9   : > { %2676 = vmatmul.mubr.msk.bf16.vlgmr.msra.gmra.mrb[0].mxu1 %vm868_vm1, %v2942_v16 }
  0xfa   : > { %1845 = vmatpush1.bf16.msra.mxu1 %v1779_v19  ;;  %1724 = vmatprep.mubr.bf16.mxu1 %v3022_v4 }
  0xfb   : > { %2006 = vmatprep.subr.bf16.mxu1 %v1942_v20 }
  0xfc   : > { %2674 = vmatmul.mubr.msk.bf16.vlgmr.msra.gmra.mrb[0].mxu0 %vm868_vm1, %v2942_v16  ;;  %v2244_v42 = vpop.permute.xlu0 %2243  ;;  %v2249_v43 = vpop.permute.xlu1 %2248 }
  0xfd   : > { %1792 = vmatpush1.bf16.msra.mxu0 %v1777_v21  ;;  %1671 = vmatprep.mubr.bf16.mxu0 %v3022_v4 }
  0xfe   : > { %1953 = vmatprep.subr.bf16.mxu0 %v1940_v23 }
 0x100   : > { %v2259_v2 = vpop.permute.xlu0 %2258 }
 0x101   : > { %2677 = vmatmul.mubr.msk.bf16.gmra.mrb[4].mxu1 %vm868_vm1, %v2943_v24 }
 0x102   : > { %1876 = vmatprep.mubr.bf16.mxu1 %v3022_v4 }
 0x104   : > { %2675 = vmatmul.mubr.msk.bf16.gmra.mrb[4].mxu0 %vm868_vm1, %v2943_v24 }
 0x105   : > { %1823 = vmatprep.mubr.bf16.mxu0 %v3022_v4 }
 0x109   : > { %2686 = vmatmul.mubr.msk.bf16.vlgmr.msra.gmra.mrb[0].mxu1 %vm868_vm1, %v2944_v27 }
 0x10a   : > { %2007 = vmatpush1.bf16.msra.mxu1 %v1941_v29  ;;  %1886 = vmatprep.mubr.bf16.mxu1 %v3022_v4 }
 0x10b   : > { %2168 = vmatprep.subr.bf16.mxu1 %v2104_v31 }
 0x10c   : > { %2684 = vmatmul.mubr.msk.bf16.vlgmr.msra.gmra.mrb[0].mxu0 %vm868_vm1, %v2944_v27 }
 0x10d   : > { %1954 = vmatpush1.bf16.msra.mxu0 %v1939_v32  ;;  %1833 = vmatprep.mubr.bf16.mxu0 %v3022_v4 }
 0x10e   : > { %2115 = vmatprep.subr.bf16.mxu0 %v2102_v33 }
 0x111   : > { %2687 = vmatmul.mubr.msk.bf16.gmra.mrb[4].mxu1 %vm868_vm1, %v2945_v34 }
 0x112   : > { %2038 = vmatprep.mubr.bf16.mxu1 %v3022_v4 }
 0x114   : > { %2685 = vmatmul.mubr.msk.bf16.gmra.mrb[4].mxu0 %vm868_vm1, %v2945_v34 }
 0x115   : > { %1985 = vmatprep.mubr.bf16.mxu0 %v3022_v4 }
 0x119   : > { %2696 = vmatmul.mubr.msk.bf16.vlgmr.msra.gmra.mrb[0].mxu1 %vm868_vm1, %v2946_v35 }
 0x11a   : > { %2169 = vmatpush1.bf16.msra.mxu1 %v2103_v36  ;;  %2048 = vmatprep.mubr.bf16.mxu1 %v3022_v4 }
 0x11c   : > { %2694 = vmatmul.mubr.msk.bf16.vlgmr.msra.gmra.mrb[0].mxu0 %vm868_vm1, %v2946_v35 }
 0x11d   : > { %2116 = vmatpush1.bf16.msra.mxu0 %v2101_v38  ;;  %1995 = vmatprep.mubr.bf16.mxu0 %v3022_v4 }
 0x121   : > { %2697 = vmatmul.mubr.msk.bf16.gmra.mrb[4].mxu1 %vm868_vm1, %v2947_v39 }
 0x122   : > { %2200 = vmatprep.mubr.bf16.mxu1 %v3022_v4 }
 0x124   : > { %2695 = vmatmul.mubr.msk.bf16.gmra.mrb[4].mxu0 %vm868_vm1, %v2947_v39 }
 0x125   : > { %2147 = vmatprep.mubr.bf16.mxu0 %v3022_v4 }
 0x129   : > { %2706 = vmatmul.mubr.msk.bf16.vlgmr.msra.gmra.mrb[0].mxu1 %vm868_vm1, %v2948_v40 }
 0x12a   : > { %2210 = vmatprep.mubr.bf16.mxu1 %v3022_v4 }
 0x12c   : > { %2704 = vmatmul.mubr.msk.bf16.vlgmr.msra.gmra.mrb[0].mxu0 %vm868_vm1, %v2948_v40 }
 0x12d   : > { %2157 = vmatprep.mubr.bf16.mxu0 %v3022_v4 }
 0x131   : > { %2707 = vmatmul.mubr.msk.bf16.gmra.mrb[4].mxu1 %vm868_vm1, %v2949_v41 }
 0x132   : > { %2385 = vmatprep.mubr.bf16.mxu1 %v3022_v4 }
 0x134   : > { %2705 = vmatmul.mubr.msk.bf16.gmra.mrb[4].mxu0 %vm868_vm1, %v2949_v41 }
 0x135   : > { %2344 = vmatprep.mubr.bf16.mxu0 %v3022_v4  ;;  %v2254_v4 = vpop.permute.xlu1 %2253 }
 0x139   : > { %v2306_v39 = vpop.permute.xlu1 %2305 }
 0x1fc   : > { %v2202_v44 = vpop.f32.mrb[0].mxu1 }
 0x1fd   : > { %v2204_v45 = vpop.f32.mrb[1].mxu1  ;;  %v2263_v46 = vadd.f32 %v2244_v42, %v2202_v44 }
 0x1fe   : > { %v2264_v47 = vadd.f32 %v2244_v42, %v2204_v45  ;;  %v2206_v48 = vpop.f32.mrb[2].mxu1 }
 0x1ff   : > { %v2267_v49 = vadd.f32 %v2249_v43, %v2206_v48  ;;  %v2208_v50 = vpop.f32.mrb[3].mxu1  ;;  %v2149_v51 = vpop.f32.mrb[0].mxu0  ;;  %v2279_v53 = vmax.f32 %v2263_v46, 0.0 }
 0x200   : > { %v2268_v52 = vadd.f32 %v2249_v43, %v2208_v50  ;;  %v2261_v55 = vadd.f32 %v2244_v42, %v2149_v51  ;;  %v2151_v56 = vpop.f32.mrb[1].mxu0  ;;  %v2280_v57 = vmax.f32 %v2264_v47, 0.0 }
 0x201   : > { %v2283_v54 = vmax.f32 %v2267_v49, 0.0  ;;  %v2262_v59 = vadd.f32 %v2244_v42, %v2151_v56  ;;  %v2153_v60 = vpop.f32.mrb[2].mxu0 }
 0x202   : > { %v2284_v58 = vmax.f32 %v2268_v52, 0.0  ;;  %v2265_v62 = vadd.f32 %v2249_v43, %v2153_v60  ;;  %v2155_v63 = vpop.f32.mrb[3].mxu0  ;;  %v2277_v5 = vmax.f32 %v2261_v55, 0.0 }
 0x203   : > { %v2296_v61 = vpack.c.bf16 %v2283_v54, %v2279_v53  ;;  %v2266_v1 = vadd.f32 %v2249_v43, %v2155_v63  ;;  %v2278_v9 = vmax.f32 %v2262_v59, 0.0 }
 0x204   : > { %v2297_v0 = vpack.c.bf16 %v2284_v58, %v2280_v57  ;;  %v2212_v3 = vpop.f32.mrb[4].mxu1  ;;  %v2281_v6 = vmax.f32 %v2265_v62, 0.0 }
 0x205   : > { %v2271_v7 = vadd.f32 %v2254_v4, %v2212_v3  ;;  %v2214_v8 = vpop.f32.mrb[5].mxu1  ;;  %v2282_v10 = vmax.f32 %v2266_v1, 0.0 }
 0x206   : > { %v2272_v11 = vadd.f32 %v2254_v4, %v2214_v8  ;;  %v2216_v12 = vpop.f32.mrb[6].mxu1  ;;  %2353 = vmatprep.subr.bf16.mxu1 %v2297_v0  ;;  %v2294_v13 = vpack.c.bf16 %v2281_v6, %v2277_v5 }
 0x207   : > { %v2275_v14 = vadd.f32 %v2259_v2, %v2216_v12  ;;  %v2218_v15 = vpop.f32.mrb[7].mxu1  ;;  %2354 = vmatpush1.bf16.msra.mxu1 %v2296_v61  ;;  %v2295_v16 = vpack.c.bf16 %v2282_v10, %v2278_v9  ;;  %v2159_v17 = vpop.f32.mrb[4].mxu0  ;;  %v2287_v19 = vmax.f32 %v2271_v7, 0.0 }
 0x208   : > { %v2276_v18 = vadd.f32 %v2259_v2, %v2218_v15  ;;  %v2269_v21 = vadd.f32 %v2254_v4, %v2159_v17  ;;  %v2161_v22 = vpop.f32.mrb[5].mxu0  ;;  %v2288_v23 = vmax.f32 %v2272_v11, 0.0 }
 0x209   : > { %v2291_v20 = vmax.f32 %v2275_v14, 0.0  ;;  %v2270_v25 = vadd.f32 %v2254_v4, %v2161_v22  ;;  %v2163_v26 = vpop.f32.mrb[6].mxu0  ;;  %2312 = vmatprep.subr.bf16.mxu0 %v2295_v16 }
 0x20a   : > { %v2292_v24 = vmax.f32 %v2276_v18, 0.0  ;;  %v2273_v28 = vadd.f32 %v2259_v2, %v2163_v26  ;;  %v2165_v29 = vpop.f32.mrb[7].mxu0  ;;  %2313 = vmatpush1.bf16.msra.mxu0 %v2294_v13  ;;  %v2285_v32 = vmax.f32 %v2269_v21, 0.0 }
 0x20b   : > { %v2300_v27 = vpack.c.bf16 %v2291_v20, %v2287_v19  ;;  %v2274_v31 = vadd.f32 %v2259_v2, %v2165_v29  ;;  %v2286_v34 = vmax.f32 %v2270_v25, 0.0 }
 0x20c   : > { %v2301_v30 = vpack.c.bf16 %v2292_v24, %v2288_v23  ;;  %v2289_v33 = vmax.f32 %v2273_v28, 0.0 }
 0x20d   : > { %v2290_v35 = vmax.f32 %v2274_v31, 0.0 }
 0x20e   : > { %2355 = vmatprep.subr.bf16.mxu1 %v2301_v30  ;;  %v2298_v36 = vpack.c.bf16 %v2289_v33, %v2285_v32 }
 0x20f   : > { %2356 = vmatpush1.bf16.msra.mxu1 %v2300_v27  ;;  %v2299_v38 = vpack.c.bf16 %v2290_v35, %v2286_v34 }
 0x211   : > { %2314 = vmatprep.subr.bf16.mxu0 %v2299_v38 }
 0x212   : > { %2709 = vmatmul.mubr.msk.bf16.vlgmr.msra.gmra.mrb[8].mxu1 %vm2308_vm9, %v2293_v37  ;;  %2315 = vmatpush1.bf16.msra.mxu0 %v2298_v36 }
 0x215   : > { %2708 = vmatmul.mubr.msk.bf16.vlgmr.msra.gmra.mrb[8].mxu0 %vm2308_vm9, %v2293_v37 }
 0x2e5   : > { %v2387_v40 = vpop.f32.mrb[8].mxu1 }
 0x2e6   : > { %v2388_v41 = vadd.f32 %v2387_v40, %v2306_v39  ;;  %v2389_v42 = vpop.f32.mrb[9].mxu1 }
 0x2e7   : > { %v2390_v43 = vadd.f32 %v2389_v42, %v2306_v39  ;;  %v2391_v44 = vpop.f32.mrb[10].mxu1 }
 0x2e8   : > { %2396 = vst [vmem:[%s776_s19 + $0x10] sm:$0xff] %v2388_v41  ;;  %v2392_v45 = vpop.f32.mrb[11].mxu1  ;;  %v2346_v46 = vpop.f32.mrb[8].mxu0 }
 0x2e9   : > { %2397 = vst [vmem:[%s776_s19 + $0x18] sm:$0xff] %v2390_v43  ;;  %v2347_v47 = vadd.f32 %v2346_v46, %v2306_v39  ;;  %v2348_v48 = vpop.f32.mrb[9].mxu0 }
 0x2ea   : > { %v2349_v49 = vadd.f32 %v2348_v48, %v2306_v39  ;;  %v2350_v50 = vpop.f32.mrb[10].mxu0 }
 0x2eb   : > { %2394 = vst [vmem:[%s776_s19] sm:$0xff] %v2347_v47  ;;  %v2351_v51 = vpop.f32.mrb[11].mxu0 }
 0x2ec   : > { %2395 = vst [vmem:[%s776_s19 + $0x8] sm:$0xff] %v2349_v49 }
 0x2ed PF: > { %s16_s25 = sadd.s32 1, %s3004_s25   ;;  %s3373_s21 = smov %s2992_s22 }
 0x2ee   : > { %p13_p12 = scmp.ge.s32.totalorder %s16_s25, 4   ;;  %s3374_s22 = smov %s3105_s30 }
 0x2ef   : > { %s3375_s23 = smov %s3000_s24  ;;  %s3376_s24 = smov %s3378_s26 }
 0x2f0   :  { %15 = sbr.rel (!%p13_p12) target bundleno = 3 (0x3), region = 264 }

</bundles_post_ra>
